<compile_context>
chip_gen: v7x
topology: tpu7x:2x2x1
jax: 0.10.0
libtpu: 0.0.40
codegen_flags: <defaults>
</compile_context>

<pallas_src>
import jax
import jax.numpy as jnp
from jax.experimental import pallas as pl
from jax.experimental.pallas import tpu as pltpu


def _round_up(x, m):
    return (x + m - 1) // m * m


def _gnn_rela_kernel(idx_ref, tab_ref, rela_ref, w_ref, b_ref, mask_ref, out_ref):
    """One row tile of: ReLU(cat([obj[s], rela, obj[o]]) @ W + b) * mask.

    tab_ref holds [S_proj ; O_proj] (pre-projected object table, bf16), so the
    subject+object contribution is a single two-hot gather matmul.
    """
    tr = rela_ref.shape[0]
    two_n_tab = tab_ref.shape[0]
    half = two_n_tab // 2

    # Vectorized "two-hot" gather on the MXU: one 1 in the S_proj half (lane
    # s_idx) and one 1 in the O_proj half (lane half + o_idx). Out-of-range /
    # padded indices select nothing (zero row) and are masked out below.
    lane = jax.lax.broadcasted_iota(jnp.int32, (tr, two_n_tab), 1)
    s_idx = idx_ref[:, 0:1]
    o_idx = idx_ref[:, 1:2] + half
    twohot = jnp.logical_or(lane == s_idx, lane == o_idx)
    twohot = twohot.astype(jnp.float32).astype(tab_ref.dtype)   # exact 0/1 in bf16

    # subject + object slices of the fused Linear (pre-projected) ...
    acc = jnp.dot(twohot, tab_ref[...], preferred_element_type=jnp.float32)
    # ... plus the middle (relation) slice.
    acc += jnp.dot(rela_ref[...], w_ref[...], preferred_element_type=jnp.float32)
    acc += b_ref[...]                      # (1, d) f32 bias broadcast
    acc = jnp.maximum(acc, 0.0)            # ReLU
    # TODO(synk): nn.Dropout(drop_prob) is identity at inference time; not applied here.
    out_ref[...] = (acc * mask_ref[...]).astype(out_ref.dtype)  # rela_masks


def gnn_forward(obj_vecs, rela_vecs, edges, rela_masks, w, b, *, mxu_dtype=jnp.bfloat16):
    """obj_vecs: (B, No, d), rela_vecs: (B, Nr, d), edges: (B, Nr, 2) int,
    rela_masks: (B, Nr), w: (3d, d) (== torch Linear.weight.T), b: (d,)."""
    B, No, d = obj_vecs.shape
    Nr = rela_vecs.shape[1]
    out_dtype = rela_vecs.dtype
    assert w.shape == (3 * d, d) and b.shape == (d,)

    # ---- feat_3d_to_2d (reshape glue) ----
    obj_flat = obj_vecs.reshape(B * No, d)
    rela_flat = rela_vecs.reshape(B * Nr, d)
    offsets = (jnp.arange(B, dtype=jnp.int32) * No)[:, None, None]
    e = (edges.astype(jnp.int32) + offsets).reshape(B * Nr, 2)
    mask_flat = rela_masks.reshape(B * Nr, 1).astype(jnp.float32)

    # ---- one-time pre-projection of the object table through W ----
    # cat([s, rela, o]) @ W == s @ W[:d] + rela @ W[d:2d] + o @ W[2d:3d]
    # The projection is O(n_tab * d * 2d) once and amortizes over all edges.
    hi = jax.lax.Precision.HIGHEST
    f32 = jnp.float32
    s_proj = jnp.dot(obj_flat.astype(f32), w[0:d].astype(f32), precision=hi)
    o_proj = jnp.dot(obj_flat.astype(f32), w[2 * d:3 * d].astype(f32), precision=hi)

    n_tab = B * No
    n_tab_pad = _round_up(n_tab, 128)          # lane-friendly gather width
    if n_tab_pad != n_tab:
        pad_tab = n_tab_pad - n_tab
        s_proj = jnp.pad(s_proj, ((0, pad_tab), (0, 0)))
        o_proj = jnp.pad(o_proj, ((0, pad_tab), (0, 0)))
    proj_tab = jnp.concatenate([s_proj, o_proj], axis=0).astype(mxu_dtype)  # (2*n_tab_pad, d)
    w_mid = w[d:2 * d].astype(mxu_dtype)                                    # (d, d)
    bias = b.reshape(1, d).astype(jnp.float32)

    # TODO(synk): for production-size graphs (n_tab_pad >~ 4K) the two-hot gather is
    # O(TR * n_tab) on MXU/VPU/VMEM; chunk the gather over the table axis or switch to
    # per-row DMA (memory_space=pl.ANY + pltpu.make_async_copy) instead of growing this dot.
    assert n_tab_pad <= 4096, "object table too large for the one-hot gather path"

    # ---- row tiling ----
    n_rows = B * Nr
    # Aim for >= ~4 grid steps (keeps both v7x TensorCores busy under "parallel"),
    # 16-row granularity for bf16 sublane packing, cap at 256 rows/step
    # (can be raised to 512 on v6e's 128 MiB VMEM when the table is small).
    TR = min(256, max(16, _round_up(pl.cdiv(n_rows, 4), 16)))
    n_pad = _round_up(n_rows, TR)
    if n_pad != n_rows:
        pad_r = n_pad - n_rows
        rela_flat = jnp.pad(rela_flat, ((0, pad_r), (0, 0)))
        e = jnp.pad(e, ((0, pad_r), (0, 0)))                 # padded rows gather row 0 ...
        mask_flat = jnp.pad(mask_flat, ((0, pad_r), (0, 0)))  # ... and are masked to zero
    rela_flat = rela_flat.astype(mxu_dtype)

    # ---- VMEM budget (hand model; per-core — each TC holds its own copy under
    #      "parallel") and an explicit scoped-VMEM limit for v5e/v6e/v7x ----
    bpe = jnp.dtype(mxu_dtype).itemsize
    resident = (2 * n_tab_pad * d + d * d) * bpe + d * 4           # proj table + W_mid + bias (single-buffered)
    per_tile = TR * (2 * 4 + d * bpe + 4) + TR * d * 4             # idx + rela + mask in, out
    temps = TR * 2 * n_tab_pad * (4 + bpe) + 2 * TR * d * 4        # iota + two-hot + f32 acc
    vmem_est = resident + 2 * per_tile + temps                     # tiles double-buffered
    assert vmem_est < 48 * 1024 * 1024, "kernel VMEM estimate exceeds per-core budget"
    vmem_limit = int(min(max(2 * vmem_est, 32 * 1024 * 1024), 64 * 1024 * 1024))

    const = dict(pipeline_mode=pl.Buffered(1))   # constant index map -> no double buffering
    grid_spec = pltpu.PrefetchScalarGridSpec(
        num_scalar_prefetch=0,
        grid=(n_pad // TR,),
        in_specs=[
            pl.BlockSpec((TR, 2), lambda t: (t, 0)),                       # edge index tile (int32)
            pl.BlockSpec((2 * n_tab_pad, d), lambda t: (0, 0), **const),   # [S_proj; O_proj] resident
            pl.BlockSpec((TR, d), lambda t: (t, 0)),                       # rela tile (bf16)
            pl.BlockSpec((d, d), lambda t: (0, 0), **const),               # W_mid resident
            pl.BlockSpec((1, d), lambda t: (0, 0), **const),               # bias
            pl.BlockSpec((TR, 1), lambda t: (t, 0)),                       # rela_masks tile
        ],
        out_specs=pl.BlockSpec((TR, d), lambda t: (t, 0)),
    )

    new_rela_flat = pl.pallas_call(
        _gnn_rela_kernel,
        out_shape=jax.ShapeDtypeStruct((n_pad, d), out_dtype),
        grid_spec=grid_spec,
        compiler_params=pltpu.CompilerParams(
            dimension_semantics=("parallel",),   # row tiles are independent -> megacore
            vmem_limit_bytes=vmem_limit,
        ),
    )(e, proj_tab, rela_flat, w_mid, bias, mask_flat)

    # ---- feat_2d_to_3d (glue): obj_vecs pass through unchanged ----
    new_obj_vecs = obj_vecs
    new_rela_vecs = new_rela_flat[:n_rows].reshape(B, Nr, d)
    return new_obj_vecs, new_rela_vecs


if __name__ == "__main__":
    # Small shapes consistent with the module: opt.rnn_size = 128
    B, No, Nr, d = 2, 8, 16, 128

    key = jax.random.PRNGKey(0)
    k1, k2, k3, k4, k5, k6 = jax.random.split(key, 6)

    obj_vecs = jax.random.normal(k1, (B, No, d), dtype=jnp.float32)
    rela_vecs = jax.random.normal(k2, (B, Nr, d), dtype=jnp.float32)
    edges = jax.random.randint(k3, (B, Nr, 2), 0, No, dtype=jnp.int32)
    rela_masks = (jax.random.uniform(k4, (B, Nr)) > 0.25).astype(jnp.float32)

    # Params for nn.Linear(3*d, d): torch weight is (d, 3d); we store its transpose.
    w = jax.random.normal(k5, (3 * d, d), dtype=jnp.float32) / jnp.sqrt(3.0 * d)
    b = jax.random.normal(k6, (d,), dtype=jnp.float32) * 0.01

    new_obj, new_rela = gnn_forward(obj_vecs, rela_vecs, edges, rela_masks, w, b)
    jax.block_until_ready((new_obj, new_rela))

    # Pure-JAX f32 reference for a correctness sanity check.
    obj_flat = obj_vecs.reshape(B * No, d)
    rela_flat = rela_vecs.reshape(B * Nr, d)
    e = (edges + (jnp.arange(B, dtype=edges.dtype) * No)[:, None, None]).reshape(B * Nr, 2)
    t_vecs = jnp.concatenate([obj_flat[e[:, 0]], rela_flat, obj_flat[e[:, 1]]], axis=1)
    ref_rela = (jnp.maximum(
        jnp.dot(t_vecs, w, precision=jax.lax.Precision.HIGHEST) + b, 0.0)
        .reshape(B, Nr, d) * rela_masks[..., None])

    assert jnp.allclose(new_obj, obj_vecs)
    max_err = float(jnp.max(jnp.abs(new_rela - ref_rela)))
    # bf16 MXU operands with f32 accumulation -> loose tolerance vs f32 reference.
    assert jnp.allclose(new_rela, ref_rela, atol=5e-2, rtol=5e-2), max_err

    print("KERNEL_OK")
</pallas_src>

<mosaic_0001>
module attributes {stable_mosaic.version = 11 : i64} {
  func.func @_gnn_rela_kernel(%arg0: i32, %arg1: memref<16x2xi32, #tpu.memory_space<vmem>>, %arg2: memref<256x128xbf16, #tpu.memory_space<vmem>>, %arg3: memref<16x128xbf16, #tpu.memory_space<vmem>>, %arg4: memref<128x128xbf16, #tpu.memory_space<vmem>>, %arg5: memref<1x128xf32, #tpu.memory_space<vmem>>, %arg6: memref<16x1xf32, #tpu.memory_space<vmem>>, %arg7: memref<16x128xf32, #tpu.memory_space<vmem>>) attributes {dimension_semantics = [#tpu.dimension_semantics<parallel>], iteration_bounds = array<i64: 2>, scalar_prefetch = 0 : i64, scratch_operands = 0 : i64, tpu.core_type = #tpu.core_type<tc>, window_params = [{transform_indices = @transform_0, window_bounds = array<i64: 16, 2>}, {pipeline_mode = #tpu.pipeline_mode<synchronous>, transform_indices = @transform_1, window_bounds = array<i64: 256, 128>}, {transform_indices = @transform_2, window_bounds = array<i64: 16, 128>}, {pipeline_mode = #tpu.pipeline_mode<synchronous>, transform_indices = @transform_3, window_bounds = array<i64: 128, 128>}, {pipeline_mode = #tpu.pipeline_mode<synchronous>, transform_indices = @transform_4, window_bounds = array<i64: 1, 128>}, {transform_indices = @transform_5, window_bounds = array<i64: 16, 1>}, {transform_indices = @transform_6, window_bounds = array<i64: 16, 128>}]} {
    %0 = tpu.iota {dimensions = array<i32: 1>} : vector<16x256xi32>
    %c0 = arith.constant 0 : index
    %c0_0 = arith.constant 0 : index
    %1 = vector.load %arg1[%c0, %c0_0] : memref<16x2xi32, #tpu.memory_space<vmem>>, vector<16x1xi32>
    %c0_1 = arith.constant 0 : index
    %c1 = arith.constant 1 : index
    %2 = vector.load %arg1[%c0_1, %c1] : memref<16x2xi32, #tpu.memory_space<vmem>>, vector<16x1xi32>
    %c128_i32 = arith.constant 128 : i32
    %3 = vector.broadcast %c128_i32 : i32 to vector<16x1xi32>
    %4 = arith.addi %2, %3 : vector<16x1xi32>
    %5 = vector.broadcast %1 : vector<16x1xi32> to vector<16x256xi32>
    %6 = arith.cmpi eq, %0, %5 : vector<16x256xi32>
    %7 = vector.broadcast %4 : vector<16x1xi32> to vector<16x256xi32>
    %8 = arith.cmpi eq, %0, %7 : vector<16x256xi32>
    %9 = arith.ori %6, %8 : vector<16x256xi1>
    %10 = arith.extui %9 : vector<16x256xi1> to vector<16x256xi32>
    %11 = arith.sitofp %10 : vector<16x256xi32> to vector<16x256xf32>
    %12 = arith.truncf %11 : vector<16x256xf32> to vector<16x256xbf16>
    %c0_2 = arith.constant 0 : index
    %c0_3 = arith.constant 0 : index
    %13 = vector.load %arg2[%c0_2, %c0_3] : memref<256x128xbf16, #tpu.memory_space<vmem>>, vector<256x128xbf16>
    %cst = arith.constant dense<0.000000e+00> : vector<16x128xf32>
    %14 = tpu.matmul %12, %13, %cst {dimension_numbers = #tpu.dot_dimension_numbers<[1], [0], [0], [1], [0, 0, 1, 1], [], []>} : vector<16x256xbf16>, vector<256x128xbf16>, vector<16x128xf32> -> vector<16x128xf32>
    %c0_4 = arith.constant 0 : index
    %c0_5 = arith.constant 0 : index
    %15 = vector.load %arg3[%c0_4, %c0_5] : memref<16x128xbf16, #tpu.memory_space<vmem>>, vector<16x128xbf16>
    %c0_6 = arith.constant 0 : index
    %c0_7 = arith.constant 0 : index
    %16 = vector.load %arg4[%c0_6, %c0_7] : memref<128x128xbf16, #tpu.memory_space<vmem>>, vector<128x128xbf16>
    %cst_8 = arith.constant dense<0.000000e+00> : vector<16x128xf32>
    %17 = tpu.matmul %15, %16, %cst_8 {dimension_numbers = #tpu.dot_dimension_numbers<[1], [0], [0], [1], [0, 0, 1, 1], [], []>} : vector<16x128xbf16>, vector<128x128xbf16>, vector<16x128xf32> -> vector<16x128xf32>
    %18 = arith.addf %14, %17 : vector<16x128xf32>
    %c0_9 = arith.constant 0 : index
    %c0_10 = arith.constant 0 : index
    %19 = vector.load %arg5[%c0_9, %c0_10] : memref<1x128xf32, #tpu.memory_space<vmem>>, vector<1x128xf32>
    %20 = vector.broadcast %19 : vector<1x128xf32> to vector<16x128xf32>
    %21 = arith.addf %18, %20 : vector<16x128xf32>
    %cst_11 = arith.constant 0.000000e+00 : f32
    %22 = vector.broadcast %cst_11 : f32 to vector<16x128xf32>
    %23 = arith.maximumf %21, %22 : vector<16x128xf32>
    %c0_12 = arith.constant 0 : index
    %c0_13 = arith.constant 0 : index
    %24 = vector.load %arg6[%c0_12, %c0_13] : memref<16x1xf32, #tpu.memory_space<vmem>>, vector<16x1xf32>
    %25 = vector.broadcast %24 : vector<16x1xf32> to vector<16x128xf32>
    %26 = arith.mulf %23, %25 : vector<16x128xf32>
    %c0_14 = arith.constant 0 : index
    %c0_15 = arith.constant 0 : index
    %27 = vector.load %arg7[%c0_14, %c0_15] : memref<16x128xf32, #tpu.memory_space<vmem>>, vector<16x128xf32>
    tpu.vector_store %arg7[%c0_14, %c0_15], %26 {strides = array<i32>} : memref<16x128xf32, #tpu.memory_space<vmem>>, vector<16x128xf32>,
    return
  }
  func.func @transform_0(%arg0: i32) -> (i32, i32) {
    %c0_i32 = arith.constant 0 : i32
    %c0_i32_0 = arith.constant 0 : i32
    return %arg0, %c0_i32 : i32, i32
  }
  func.func @transform_1(%arg0: i32) -> (i32, i32) {
    %c0_i32 = arith.constant 0 : i32
    %c0_i32_0 = arith.constant 0 : i32
    %c0_i32_1 = arith.constant 0 : i32
    return %c0_i32, %c0_i32_0 : i32, i32
  }
  func.func @transform_2(%arg0: i32) -> (i32, i32) {
    %c0_i32 = arith.constant 0 : i32
    %c0_i32_0 = arith.constant 0 : i32
    return %arg0, %c0_i32 : i32, i32
  }
  func.func @transform_3(%arg0: i32) -> (i32, i32) {
    %c0_i32 = arith.constant 0 : i32
    %c0_i32_0 = arith.constant 0 : i32
    %c0_i32_1 = arith.constant 0 : i32
    return %c0_i32, %c0_i32_0 : i32, i32
  }
  func.func @transform_4(%arg0: i32) -> (i32, i32) {
    %c0_i32 = arith.constant 0 : i32
    %c0_i32_0 = arith.constant 0 : i32
    %c0_i32_1 = arith.constant 0 : i32
    return %c0_i32, %c0_i32_0 : i32, i32
  }
  func.func @transform_5(%arg0: i32) -> (i32, i32) {
    %c0_i32 = arith.constant 0 : i32
    %c0_i32_0 = arith.constant 0 : i32
    return %arg0, %c0_i32 : i32, i32
  }
  func.func @transform_6(%arg0: i32) -> (i32, i32) {
    %c0_i32 = arith.constant 0 : i32
    %c0_i32_0 = arith.constant 0 : i32
    return %arg0, %c0_i32 : i32, i32
  }
}

</mosaic_0001>

<bundles_post_ra>
// kernel: tpu_custom_call.1
= control target key start
LH: loop header
LB: loop body
LE: loop exit
PB: predicated region body
PF: predicated region fallthrough
CT: control target
= control target key end

     0   :  { %11 = vsyncpa [#allocation3], 0  ;;  %s1441_s0 = inlined_call_operand.vmem [shape: s32[32,2], index: 0, kind: input, shape index: {}]   ;;  %s1442_s1 = inlined_call_operand.hbm [shape: bf16[256,128], index: 1, kind: input, shape index: {}]   ;;  %s1443_s2 = inlined_call_operand.hbm [shape: bf16[32,128], index: 2, kind: input, shape index: {}]   ;;  %s1444_s3 = inlined_call_operand.vmem [shape: bf16[128,128], index: 3, kind: input, shape index: {}]   ;;  %s1445_s4 = inlined_call_operand.vmem [shape: f32[1,128], index: 4, kind: input, shape index: {}]   ;;  %s1446_s5 = inlined_call_operand.vmem [shape: f32[32,1], index: 5, kind: input, shape index: {}]   ;;  %s1447_s6 = inlined_call_operand.hbm [shape: f32[32,128], index: 6, kind: output, shape index: {}]  }
   0x1   :  { %12 = vsyncpa [#allocation6], 0 }
   0x2   :  { %14 = vsyncpa [#allocation6 + $0x1], 0 }
   0x3   :  { %15 = vsyncpa [#allocation4], 0 }
   0x4   :  { %17 = vsyncpa [#allocation4 + $0x1], 0  ;;  %s1183_s21 = smov 0   ;;  %s1185_s22 = smov 0  }
   0x5   :  { %s1187_s23 = smov 0   ;;  %s1189_s24 = smov 0  }
   0x6 LB: > { %s1204_s25 = sadd.s32 4294967295, %s1134_s24   ;;  %s805_s26 = sadd.s32 4294967294, %s1134_s24   ;;  %s1134_s24 = sphi %s1189_s24, %s1467_s24   ;;  %s1130_s23 = sphi %s1187_s23, %s1466_s23   ;;  %s1126_s22 = sphi %s1185_s22, %s1465_s22   ;;  %s1122_s21 = sphi %s1183_s21, %s1464_s21  }
   0x7   : > { %p90_p0 = scmp.ne.s32.totalorder %s1126_s22, %s1122_s21  ;;  %p1448_p1 = scmp.eq.s32.totalorder %s1204_s25, 0 }
   0x8   : > { %p188_p3 = scmp.eq.s32.totalorder %s805_s26, 1  ;;  %p806_p5 = scmp.ge.s32.totalorder %s1134_s24, 1 }
   0x9   : > { %p1213_p4 = por %p1448_p1, %p90_p0  ;;  %p195_p7 = scmp.lt.s32.totalorder %s1134_s24, 3 }
   0xa   : > { %p1218_p6 = por %p188_p3, %p90_p0  ;;  %s1136_s30 = smov [#allocation2]  }
   0xb   : > { %s1451_s27 = scalar_select %p1213_p4, 1, 0 }
   0xc   : > { %s1452_s28 = scalar_select %p1218_p6, 1, 0 }
   0xd   : > { %p1223_p8 = pnand %p806_p5, %p195_p7  ;;  %s207_s7 = sshll.u32 %s1136_s30, 4  ;;  %s1227_s7 = int_to_ptr.vmem [resolvable:$true] %s207_s7 }
   0xe   : > { %s1239_s9 = sadd.s32 1, %s1134_s24   ;;  %s77_s10 = sadd.s32 1, %s1130_s23 }
   0xf   : > { %s1453_s29 = scalar_select %p1223_p8, 1, 0 }
  0x10   : > { %p920_p9 = pneg %p1223_p8  ;;  %s74_s11 = ssub.s32 %s1134_s24, %s1239_s9 }
  0x11   : > { %s1006_s14 = scalar_lea.hbm %s1442_s1, 2048 }
  0x12   : > { %p1234_p11 = pnand %p920_p9, %p1448_p1  ;;  %p1007_p12 = scmp.ne.s32.totalorder %s1442_s1, %s1006_s14 }
  0x13   : > { %p1013_p5 = scmp.lt.u32.totalorder %s1006_s14, %s1442_s1 }
  0x14   : > { %p1008_p13 = pneg %p1234_p11 }
  0x16   : > { %p1009_p0 = pnand %p1008_p13, %p1007_p12 }
  0x18   : > { %p1010_p3 = pneg %p1009_p0 }
  0x1a   : > { %p1015_p7 = pnand %p1013_p5, %p1010_p3 }
  0x1c   : > { %1018 = shalt.err (!%p1015_p7)
}
  0x1d   : > { %s1019_s19 = scalar_lea.vmem %s1227_s7, 2048  ;;  %p1027_p2 = scmp.lt.s32.totalorder %s1227_s7, %s1227_s7 }
  0x1e   : > { %p1020_p9 = scmp.ne.s32.totalorder %s1227_s7, %s1019_s19  ;;  %p1028_p6 = scmp.lt.s32.totalorder %s1019_s19, %s1019_s19 }
  0x20   : > { %p1022_p10 = pnand %p1020_p9, %p1008_p13  ;;  %p1029_p4 = por %p1028_p6, %p1027_p2 }
  0x22   : > { %p1023_p1 = pneg %p1022_p10 }
  0x24   : > { %p1030_p8 = pnand %p1029_p4, %p1023_p1 }
  0x26   : > { %1033 = shalt.err (!%p1030_p8)
}
  0x27   : > { %s1137_s20 = smov 64   ;;  %s1138_s26 = smov 4  }
  0x28   : > { %923 = dma.hbm_to_vmem [thread:$0]  (!%p1234_p11), %s1442_s1, 2048, %s1227_s7, [#allocation3], %s1137_s20, %s1137_s20, %s1138_s26  }
  0x29   : > { %p75_p1 = scmp.eq.s32.totalorder %s74_s11, 0  ;;  %p84_p2 = scmp.ne.s32.totalorder %s1130_s23, %s1126_s22 }
  0x2a   : > { %p85_p4 = scmp.eq.s32.totalorder %s1134_s24, 0  ;;  %p933_p6 = scmp.lt.s32.totalorder %s1134_s24, 2 }
  0x2b   : > { %s1273_s13 = scalar_select %p75_p1, %s1130_s23, %s77_s10  }
  0x2c   : > { %p86_p8 = por %p85_p4, %p84_p2  ;;  %p1455_p10 = scmp.eq.s32.totalorder %s1204_s25, 1 }
  0x2d   : > { %s236_s8 = sand.u32 1, %s1130_s23   ;;  %s859_s15 = sshll.u32 %s1134_s24, 7 }
  0x2e   : > { %p1277_p12 = por %p1455_p10, %p84_p2  ;;  %s809_s16 = sshll.u32 %s236_s8, 3 }
  0x2f   : > { %s1286_s19 = scalar_lea.hbm %s1443_s2, %s859_s15  ;;  %s240_s7 = scalar_lea.vmem [#allocation5], %s809_s16 }
  0x30   : > { %s247_s10 = sshll.u32 %s240_s7, 4  ;;  %p1288_p11 = pnand %p933_p6, %p86_p8  ;;  %s1292_s10 = int_to_ptr.vmem [resolvable:$true] %s247_s10 }
  0x31   : > { %s1294_s30 = scalar_lea.sflag [#allocation6], %s236_s8  ;;  %s1034_s12 = scalar_lea.hbm %s1286_s19, 128 }
  0x32   : > { %p1035_p13 = scmp.ne.s32.totalorder %s1286_s19, %s1034_s12  ;;  %p1036_p0 = pneg %p1288_p11 }
  0x33   : > { %s1039_s17 = scalar_lea.hbm %s1443_s2, 256  ;;  %p1040_p7 = scmp.lt.u32.totalorder %s1286_s19, %s1443_s2 }
  0x34   : > { %p1037_p3 = pnand %p1036_p0, %p1035_p13  ;;  %p1041_p9 = scmp.lt.u32.totalorder %s1039_s17, %s1034_s12 }
  0x35   : > { %p1043_p2 = scmp.lt.u32.totalorder %s1034_s12, %s1286_s19 }
  0x36   : > { %p1038_p5 = pneg %p1037_p3  ;;  %p1042_p1 = por %p1041_p9, %p1040_p7 }
  0x38   : > { %p1044_p4 = por %p1043_p2, %p1042_p1 }
  0x3a   : > { %p1045_p6 = pnand %p1044_p4, %p1038_p5 }
  0x3c   : > { %1048 = shalt.err (!%p1045_p6)
}
  0x3d   : > { %s1049_s8 = scalar_lea.vmem %s1292_s10, 128  ;;  %s1139_s15 = smov [#allocation5]  }
  0x3e   : > { %p1050_p8 = scmp.ne.s32.totalorder %s1292_s10, %s1049_s8  ;;  %s1054_s16 = sshll.u32 %s1139_s15, 4  ;;  %s1055_s16 = int_to_ptr.vmem [resolvable:$false] %s1054_s16 }
  0x3f   : > { %s1056_s18 = scalar_lea.vmem %s1055_s16, 256  ;;  %p1057_p3 = scmp.lt.s32.totalorder %s1292_s10, %s1055_s16 }
  0x40   : > { %p1052_p10 = pnand %p1050_p8, %p1036_p0  ;;  %p1058_p7 = scmp.lt.s32.totalorder %s1056_s18, %s1049_s8 }
  0x42   : > { %p1053_p13 = pneg %p1052_p10  ;;  %p1059_p9 = por %p1058_p7, %p1057_p3 }
  0x44   : > { %p1060_p1 = pnand %p1059_p9, %p1053_p13 }
  0x46   : > { %1063 = shalt.err (!%p1060_p1)
}
  0x47   : > { %927 = dma.hbm_to_vmem [thread:$0]  (!%p1288_p11), %s1286_s19, 128, %s1292_s10, %s1294_s30, %s1137_s20, %s1137_s20, %s1138_s26  }
  0x48   : > { %p1458_p0 = scmp.ne.s32.totalorder %s1453_s29, 0 }
  0x49   : > { %p1459_p5 = scmp.eq.s32.totalorder (!%p1458_p0), %s1204_s25, 0 }
  0x4a   : > { %268 = sbr.rel (%p1458_p0) target bundleno = 472 (0x1d8), region = 44 }
  0x51   : > { %1109 = dma.done.wait (%p1459_p5), [#allocation3], 2048   ;;  %p1460_p2 = pmov %p1459_p5 }
  0x52   : > { %s1332_s12 = sand.u32 1, %s1126_s22   ;;  %p1461_p11 = scmp.ne.s32.totalorder %s1451_s27, 0 }
  0x53   : > { %1111 = vsyncadd (%p1460_p2), [#allocation3], 4294965248  ;;  %s814_s11 = sshll.u32 %s1332_s12, 3  ;;  %s275_s17 = scalar_lea.sflag [#allocation6], %s1332_s12 }
  0x54   : > { %s1336_s7 = scalar_lea.vmem [#allocation5], %s814_s11 }
  0x55   : > { %1113 = dma.done.wait (%p1461_p11), %s275_s17, 128  }
  0x56   : > { %1115 = vsyncadd (%p1461_p11), %s275_s17, 4294967168  ;;  %s816_s29 = sshll.u32 %s1204_s25, 1  ;;  %v1140_v0 = vmov 0   ;;  %v1141_v1 = vmov 1   ;;  %v1142_v2 = vmov 0.0   ;;  %v981_v6 = vld [vmem:[#allocation2 + $0x40] sm:$0xff]   ;;  %v332_v34 = vlaneseq }
  0x57   : > { %978 = vset.pattern.permute.xlu0 %v1140_v0  ;;  %p318_p4 = scmp.lt.s32.totalorder %s816_s29, 3  ;;  %979 = vset.pattern.permute.xlu1 %v1141_v1  ;;  %v982_v8 = vld [vmem:[%s1444_s3] sm:$0xff]   ;;  %v984_v11 = vld [vmem:[#allocation2 + $0x48] sm:$0xff]   ;;  %v987_v14 = vld [vmem:[#allocation2 + $0x50] sm:$0xff]   ;;  %vm1143_vm0 = vmmov 0   ;;  %s860_s26 = sshll.u32 %s1204_s25, 8 }
  0x58   : > { %892 = vmatprep.subr.bf16.mxu0 %v1142_v2  ;;  %870 = vmatprep.subr.bf16.mxu1 %v981_v6  ;;  %v983_v10 = vld [vmem:[#allocation2] sm:$0xff]   ;;  %v985_v12 = vld [vmem:[%s1444_s3 + $0x8] sm:$0xff]   ;;  %v988_v15 = vld [vmem:[%s1444_s3 + $0x10] sm:$0xff]   ;;  %v333_v35 = vand.u32 127, %v332_v34  ;;  %v1144_v41 = vmov 1.0|1.0   ;;  %s1397_s27 = scalar_lea.hbm %s1447_s6, %s860_s26 }
  0x59   : > { %s1469_s29 = smov (!%p318_p4, %s816_s29), 3  ;;  %893 = vmatpush3.bf16.msra.mxu0 %v982_v8  ;;  %871 = vmatpush3.bf16.msra.mxu1 %v983_v10  ;;  %v986_v13 = vld [vmem:[#allocation2 + $0x8] sm:$0xff]   ;;  %v989_v16 = vld [vmem:[#allocation2 + $0x10] sm:$0xff]   ;;  %v990_v17 = vld [vmem:[#allocation2 + $0x58] sm:$0xff]   ;;  %s683_s30 = scalar_lea.sflag [#allocation4], %s1332_s12 }
  0x5a   : > { %s817_s20 = sshll.u32 %s1469_s29, 3  ;;  %894 = vmatprep.subr.bf16.mxu0 %v1142_v2  ;;  %872 = vmatprep.subr.bf16.mxu1 %v984_v11  ;;  %v991_v18 = vld [vmem:[%s1444_s3 + $0x18] sm:$0xff]   ;;  %v993_v20 = vld [vmem:[#allocation2 + $0x60] sm:$0xff]   ;;  %v996_v23 = vld [vmem:[#allocation2 + $0x68] sm:$0xff]   ;;  %v334_v36 = vadd.s32 128, %v333_v35  ;;  %s1145_s25 = smov [#allocation7]  }
  0x5b   : > { %s321_s10 = scalar_lea.vmem %s1441_s0, %s817_s20  ;;  %s1350_s8 = scalar_lea.vmem %s1446_s5, %s817_s20  ;;  %908 = vmatprep.mubr.msk.bf16.mxu0 %vm1143_vm0, %v1142_v2  ;;  %v992_v19 = vld [vmem:[#allocation2 + $0x18] sm:$0xff]   ;;  %v994_v21 = vld [vmem:[%s1444_s3 + $0x20] sm:$0xff]   ;;  %v997_v24 = vld [vmem:[%s1444_s3 + $0x28] sm:$0xff]  }
  0x5c   : > { %v335_v3 = vld [vmem:[%s321_s10] sm:$0xff]  ;;  %v336_v4 = vld [vmem:[%s321_s10 + $0x8] sm:$0xff]  ;;  %v999_v26 = vld [vmem:[#allocation2 + $0x70] sm:$0xff]   ;;  %s1068_s16 = sshll.u32 %s1145_s25, 4  ;;  %s1069_s16 = int_to_ptr.vmem [resolvable:$false] %s1068_s16 }
  0x5d   : > { %340 = vperm.xlu0 %978, %v335_v3   ;;  %v337_v5 = vadd.s32 128, %v335_v3  ;;  %v338_v7 = vadd.s32 128, %v336_v4  ;;  %v666_v9 = vld [vmem:[%s1350_s8] sm:$0xff]  ;;  %895 = vmatpush3.bf16.msra.mxu0 %v985_v12  ;;  %v998_v25 = vld [vmem:[#allocation2 + $0x28] sm:$0xff]   ;;  %v1000_v27 = vld [vmem:[%s1444_s3 + $0x30] sm:$0xff]   ;;  %s1070_s18 = scalar_lea.vmem %s1069_s16, 512 }
  0x5e   : > { %873 = vmatpush3.bf16.msra.mxu1 %v986_v13  ;;  %896 = vmatprep.subr.bf16.mxu0 %v1142_v2  ;;  %v995_v22 = vld [vmem:[#allocation2 + $0x20] sm:$0xff]   ;;  %v1001_v28 = vld [vmem:[#allocation2 + $0x30] sm:$0xff]   ;;  %v667_v29 = vld [vmem:[%s1350_s8 + $0x8] sm:$0xff] }
  0x5f   : > { %350 = vperm.xlu1 %979, %v337_v5   ;;  %874 = vmatprep.subr.bf16.mxu1 %v987_v14  ;;  %v1002_v30 = vld [vmem:[#allocation2 + $0x78] sm:$0xff]   ;;  %v1005_v33 = vld [vmem:[%s1336_s7] sm:$0xff]   ;;  %s815_s7 = sshll.u32 %s1332_s12, 4 }
  0x60   : > { %v1003_v31 = vld [vmem:[%s1444_s3 + $0x38] sm:$0xff]   ;;  %v853_v51 = vld [vmem:[%s1445_s4] ss:$0 sm:$0xff]  ;;  %s316_s29 = scalar_lea.vmem [#allocation7], %s815_s7 }
  0x61   : > { %343 = vperm.xlu0 %978, %v336_v4   ;;  %897 = vmatpush3.bf16.msra.mxu0 %v988_v15  ;;  %v1004_v32 = vld [vmem:[#allocation2 + $0x38] sm:$0xff]   ;;  %s696_s20 = sshll.u32 %s316_s29, 4  ;;  %s1392_s20 = int_to_ptr.vmem [resolvable:$true] %s696_s20 }
  0x62   : > { %875 = vmatpush3.bf16.msra.mxu1 %v989_v16  ;;  %898 = vmatprep.subr.bf16.mxu0 %v1142_v2  ;;  %s1064_s15 = scalar_lea.vmem %s1392_s20, 256  ;;  %p1071_p13 = scmp.lt.s32.totalorder %s1392_s20, %s1069_s16 }
  0x63   : > { %353 = vperm.xlu1 %979, %v338_v7   ;;  %876 = vmatprep.subr.bf16.mxu1 %v990_v17  ;;  %p1065_p6 = scmp.ne.s32.totalorder %s1392_s20, %s1064_s15  ;;  %p1072_p3 = scmp.lt.s32.totalorder %s1070_s18, %s1064_s15 }
  0x65   : > { %670 = vperm.xlu0 %978, %v666_v9   ;;  %899 = vmatpush3.bf16.msra.mxu0 %v991_v18  ;;  %p1066_p8 = pnand %p1065_p6, %p1277_p12  ;;  %p1073_p7 = por %p1072_p3, %p1071_p13 }
  0x66   : > { %877 = vmatpush3.bf16.msra.mxu1 %v992_v19  ;;  %900 = vmatprep.subr.bf16.mxu0 %v1142_v2 }
  0x67   : > { %980 = vset.pattern.permute.xlu1 %v1140_v0  ;;  %878 = vmatprep.subr.bf16.mxu1 %v993_v20  ;;  %p1067_p10 = pneg %p1066_p8 }
  0x68   : > { %675 = vperm.xlu1 %980, %v667_v29  }
  0x69   : > { %901 = vmatpush3.bf16.msra.mxu0 %v994_v21  ;;  %p1074_p9 = pnand %p1073_p7, %p1067_p10 }
  0x6a   : > { %879 = vmatpush3.bf16.msra.mxu1 %v995_v22  ;;  %902 = vmatprep.subr.bf16.mxu0 %v1142_v2 }
  0x6b   : > { %880 = vmatprep.subr.bf16.mxu1 %v996_v23 }
  0x6d   : > { %903 = vmatpush3.bf16.msra.mxu0 %v997_v24 }
  0x6e   : > { %881 = vmatpush3.bf16.msra.mxu1 %v998_v25  ;;  %904 = vmatprep.subr.bf16.mxu0 %v1142_v2 }
  0x6f   : > { %882 = vmatprep.subr.bf16.mxu1 %v999_v26 }
  0x71   : > { %905 = vmatpush3.bf16.msra.mxu0 %v1000_v27 }
  0x72   : > { %883 = vmatpush3.bf16.msra.mxu1 %v1001_v28  ;;  %906 = vmatprep.subr.bf16.mxu0 %v1142_v2 }
  0x73   : > { %884 = vmatprep.subr.bf16.mxu1 %v1002_v30 }
  0x75   : > { %907 = vmatpush3.bf16.msra.mxu0 %v1003_v31 }
  0x76   : > { %885 = vmatpush3.bf16.msra.mxu1 %v1004_v32 }
  0x78   : > { %909 = vmatmul.mubr.bf16.vlgmr.msra.gmra.mrb[0].mxu0 %v1005_v33 }
  0xdc   : > { %v341_v37 = vpop.permute.xlu0 %340 }
  0xdd   : > { %vm345_vm1 = vcmp.eq.s32.totalorder %v333_v35, %v341_v37  ;;  %vm346_vm3 = vcmp.eq.s32.totalorder %v334_v36, %v341_v37 }
  0xde   : > { %v351_v38 = vpop.permute.xlu1 %350 }
  0xdf   : > { %vm355_vm2 = vcmp.eq.s32.totalorder %v333_v35, %v351_v38  ;;  %vm356_vm4 = vcmp.eq.s32.totalorder %v334_v36, %v351_v38 }
  0xe0   : > { %v344_v39 = vpop.permute.xlu0 %343  ;;  %vm359_vm5 = vmor %vm345_vm1, %vm355_vm2 }
  0xe1   : > { %vm347_vm6 = vcmp.eq.s32.totalorder %v333_v35, %v344_v39  ;;  %vm360_vm9 = vmor %vm346_vm3, %vm356_vm4  ;;  %vm348_vm10 = vcmp.eq.s32.totalorder %v334_v36, %v344_v39 }
  0xe2   : > { %v354_v40 = vpop.permute.xlu1 %353 }
  0xe3   : > { %vm357_vm7 = vcmp.eq.s32.totalorder %v333_v35, %v354_v40  ;;  %vm358_vm8 = vcmp.eq.s32.totalorder %v334_v36, %v354_v40 }
  0xe4   : > { %vm361_vm11 = vmor %vm347_vm6, %vm357_vm7  ;;  %v671_v58 = vpop.permute.xlu0 %670 }
  0xe5   : > { %vm362_vm12 = vmor %vm348_vm10, %vm358_vm8 }
  0xe6   : > { %vm849_vm13 = vmpackc.low %vm362_vm12, %vm360_vm9 }
  0xe7   : > { %850 = vmatprep.mubr.msk.bf16.mxu1 %vm849_vm13, %v1144_v41  ;;  %vm851_vm14 = vmpackc.low %vm361_vm11, %vm359_vm5  ;;  %v676_v59 = vpop.permute.xlu1 %675 }
  0xe8   : > { %852 = vmatmul.mubr.msk.bf16.vlgmr.msra.gmra.mrb[0].mxu1 %vm851_vm14, %v1144_v41 }
 0x14b   : > { %v511_v42 = vpop.f32.mrb[0].mxu0 }
 0x14c   : > { %v910_v43 = vpop.f32.mrb[1].mxu0 }
 0x14d   : > { %v514_v44 = vpop.f32.mrb[2].mxu0 }
 0x14e   : > { %v911_v45 = vpop.f32.mrb[3].mxu0 }
 0x1bb   : > { %v886_v46 = vpop.f32.mrb[0].mxu1 }
 0x1bc   : > { %v887_v47 = vpop.f32.mrb[1].mxu1 }
 0x1bd   : > { %v888_v48 = vadd.f32 %v887_v47, %v886_v46  ;;  %v889_v49 = vpop.f32.mrb[2].mxu1 }
 0x1be   : > { %v890_v50 = vpop.f32.mrb[3].mxu1 }
 0x1bf   : > { %v649_v52 = vadd.f32 %v888_v48, %v511_v42  ;;  %v891_v53 = vadd.f32 %v890_v50, %v889_v49 }
 0x1c1   : > { %v652_v54 = vadd.f32 %v891_v53, %v514_v44  ;;  %v662_v55 = vadd.f32 %v853_v51, %v649_v52 }
 0x1c3   : > { %v663_v56 = vadd.f32 %v853_v51, %v652_v54  ;;  %v664_v57 = vmax.f32 %v662_v55, 0.0 }
 0x1c5   : > { %v665_v60 = vmax.f32 %v663_v56, 0.0  ;;  %v678_v61 = vmul.f32 %v671_v58, %v664_v57 }
 0x1c7   : > { %680 = vst [vmem:[%s316_s29] sm:$0xff] %v678_v61  ;;  %v679_v62 = vmul.f32 %v676_v59, %v665_v60 }
 0x1c9   : > { %681 = vst [vmem:[%s316_s29 + $0x8] sm:$0xff] %v679_v62 }
 0x1ca   : > { %1077 = shalt.err (!%p1074_p9)
}
 0x1cb   : > { %s1078_s11 = scalar_lea.hbm %s1397_s27, 256  ;;  %s1082_s17 = scalar_lea.hbm %s1447_s6, 512 }
 0x1cc   : > { %p1079_p1 = scmp.ne.s32.totalorder %s1397_s27, %s1078_s11  ;;  %p1083_p2 = scmp.lt.u32.totalorder %s1397_s27, %s1447_s6 }
 0x1cd   : > { %p1084_p11 = scmp.lt.u32.totalorder %s1082_s17, %s1078_s11  ;;  %p1086_p6 = scmp.lt.u32.totalorder %s1078_s11, %s1397_s27 }
 0x1ce   : > { %p1080_p0 = pnand %p1079_p1, %p1277_p12 }
 0x1cf   : > { %p1085_p4 = por %p1084_p11, %p1083_p2 }
 0x1d0   : > { %p1081_p5 = pneg %p1080_p0 }
 0x1d1   : > { %p1087_p8 = por %p1086_p6, %p1085_p4 }
 0x1d3   : > { %p1088_p10 = pnand %p1087_p8, %p1081_p5 }
 0x1d5   : > { %1091 = shalt.err (!%p1088_p10)
}
 0x1d6   : > { %s1146_s19 = smov 128   ;;  %s1147_s10 = smov 8  }
 0x1d7   : > { %918 = dma.vmem_to_hbm [thread:$0]  (%p1277_p12), %s1392_s20, 256, %s1397_s27, %s683_s30, %s1146_s19, %s1146_s19, %s1147_s10  }
 0x1d8 PF: > { %s711_s15 = sand.u32 1, %s1122_s21   ;;  %p1462_p13 = scmp.ne.s32.totalorder %s1452_s28, 0 }
 0x1d9   : > { %p1463_p3 = scmp.ge.s32.totalorder %s1134_s24, 2  ;;  %s712_s25 = scalar_lea.sflag [#allocation4], %s711_s15 }
 0x1db   : > { %p929_p7 = pnand %p1463_p3, %p1462_p13 }
 0x1dd   : > { %1117 = dma.done.wait (!%p929_p7), %s712_s25, 256  }
 0x1de   : > { %1119 = vsyncadd (!%p929_p7), %s712_s25, 4294967040  ;;  %p20_p9 = scmp.ge.s32.totalorder %s1239_s9, 4   ;;  %s1464_s21 = smov %s1126_s22 }
 0x1df   : > { %s1465_s22 = smov %s1130_s23  ;;  %s1466_s23 = smov %s1273_s13 }
 0x1e0   : > { %s1467_s24 = smov %s1239_s9  ;;  %22 = sbr.rel (!%p20_p9) target bundleno = 6 (0x6), region = 100 }
 0x1e7   :  { %717 = vsyncpa [#allocation3], 1 }
 0x1e8   :  { %719 = vsyncpa [#allocation3 + $0x1], 1 }
 0x1e9   :  { %720 = vsyncpa [#allocation6], 1 }
 0x1ea   :  { %722 = vsyncpa [#allocation6 + $0x1], 1 }
 0x1eb   :  { %723 = vsyncpa [#allocation4], 1 }
 0x1ec   :  { %725 = vsyncpa [#allocation4 + $0x1], 1 }

</bundles_post_ra>
